<compile_context>
chip_gen: v5e
topology: v5e:2x2
jax: 0.10.0
libtpu: 0.0.40
codegen_flags: <defaults>
</compile_context>

<pallas_src>
import math

import jax
import jax.numpy as jnp
from jax.experimental import pallas as pl
from jax.experimental.pallas import tpu as pltpu


def _round_up(x, m):
    return ((x + m - 1) // m) * m


def _conv_agg_kernel(hF_ref, hP_ref, wF_ref, bF_ref, wP_ref, bP_ref,
                     wFuF_ref, wFuP_ref, bFu_ref,
                     hFo_ref, hPo_ref, f_ref):
    cdt = wF_ref.dtype                                  # compute dtype (f32 or bf16)

    xF = hF_ref[...].astype(cdt)
    xP = hP_ref[...].astype(cdt)

    # Branch matmuls (two K=64 MXU passes), f32 accumulation, f32 bias + ReLU.
    hF_o = jnp.maximum(
        jnp.dot(xF, wF_ref[...], preferred_element_type=jnp.float32) + bF_ref[...], 0.0)
    hP_o = jnp.maximum(
        jnp.dot(xP, wP_ref[...], preferred_element_type=jnp.float32) + bP_ref[...], 0.0)

    # Fuse: relu(concat(hF_o, hP_o) @ WFuse^T + b) == relu(hF_o @ W_top + hP_o @ W_bot + b)
    # (weight split in pack_params) — no in-kernel concat, no HBM round trip of h.
    f = jnp.maximum(
        jnp.dot(hF_o.astype(cdt), wFuF_ref[...], preferred_element_type=jnp.float32)
        + jnp.dot(hP_o.astype(cdt), wFuP_ref[...], preferred_element_type=jnp.float32)
        + bFu_ref[...], 0.0)

    hFo_ref[...] = hF_o.astype(hFo_ref.dtype)
    hPo_ref[...] = hP_o.astype(hPo_ref.dtype)
    f_ref[...] = f.astype(f_ref.dtype)


def pack_params(params, compute_dtype=jnp.float32):
    """One-time weight packing: transpose branch weights, split the fuse weight into its
    top (acts on hF_out) and bottom (acts on hP_out) halves.  Biases stay f32."""
    F = params["wF"].shape[0]
    Fu = params["wFuse"].shape[0]
    return {
        "wF": params["wF"].T.astype(compute_dtype),                 # (F, F)
        "bF": params["bF"].astype(jnp.float32).reshape(1, F),
        "wP": params["wP"].T.astype(compute_dtype),                 # (F, F)
        "bP": params["bP"].astype(jnp.float32).reshape(1, F),
        "wFuF": params["wFuse"][:, :F].T.astype(compute_dtype),     # (F, Fu)
        "wFuP": params["wFuse"][:, F:].T.astype(compute_dtype),     # (F, Fu)
        "bFu": params["bFuse"].astype(jnp.float32).reshape(1, Fu),
        "feat_dim": F, "fusion_dim": Fu,
    }


def conv_aggregation(hF, hP, packed, *, tm=2048):
    """hF, hP: (..., feat_dim). Returns (hF_out, hP_out, f) matching the PyTorch module."""
    F = packed["feat_dim"]
    Fu = packed["fusion_dim"]
    lead = hF.shape[:-1]
    M = math.prod(lead) if lead else 1

    # Free reshapes — no concat, no padding, no post-kernel slicing.
    hF2 = hF.reshape(M, F)
    hP2 = hP.reshape(M, F)

    cdt = packed["wF"].dtype
    sublane = 16 if (cdt == jnp.bfloat16 or hF.dtype == jnp.bfloat16) else 8

    # Row tile: cap at tm, but also cap at ~half the rows (rounded to a sublane multiple)
    # so the grid has >= 2 steps and a v7x megacore can shard it across both TensorCores.
    half = _round_up(max(-(-M // 2), 1), sublane)
    tm_eff = max(min(tm, half), sublane)
    grid = (pl.cdiv(M, tm_eff),)        # partial last block handled by Pallas masking

    row = lambda d: pl.BlockSpec((tm_eff, d), lambda i: (i, 0))
    full = lambda a: pl.BlockSpec(a.shape, lambda i: (0, 0))

    out_shapes = (jax.ShapeDtypeStruct((M, F), hF.dtype),
                  jax.ShapeDtypeStruct((M, F), hF.dtype),
                  jax.ShapeDtypeStruct((M, Fu), hF.dtype))

    hF_o, hP_o, f = pl.pallas_call(
        _conv_agg_kernel,
        out_shape=out_shapes,
        grid_spec=pl.GridSpec(
            grid=grid,
            in_specs=[row(F), row(F),
                      full(packed["wF"]), full(packed["bF"]),
                      full(packed["wP"]), full(packed["bP"]),
                      full(packed["wFuF"]), full(packed["wFuP"]),
                      full(packed["bFu"])],
            out_specs=[row(F), row(F), row(Fu)]),
        compiler_params=pltpu.CompilerParams(
            dimension_semantics=("parallel",),
            vmem_limit_bytes=32 * 1024 * 1024),
    )(hF2, hP2,
      packed["wF"], packed["bF"], packed["wP"], packed["bP"],
      packed["wFuF"], packed["wFuP"], packed["bFu"])

    return (hF_o.reshape(*lead, F),
            hP_o.reshape(*lead, F),
            f.reshape(*lead, Fu))


def init_params(key, feat_dim=64, fusion_dim=64, dtype=jnp.float32):
    """Deterministic init matching the PyTorch module's parameter shapes."""
    ks = jax.random.split(key, 6)

    def lin(kw, kb, out_d, in_d):
        bound = 1.0 / (in_d ** 0.5)
        w = jax.random.uniform(kw, (out_d, in_d), dtype, -bound, bound)
        b = jax.random.uniform(kb, (out_d,), dtype, -bound, bound)
        return w, b

    wF, bF = lin(ks[0], ks[1], feat_dim, feat_dim)
    wP, bP = lin(ks[2], ks[3], feat_dim, feat_dim)
    wFuse, bFuse = lin(ks[4], ks[5], fusion_dim, feat_dim * 2)
    return {"wF": wF, "bF": bF, "wP": wP, "bP": bP, "wFuse": wFuse, "bFuse": bFuse}


def _reference(hF, hP, p):
    hF_o = jnp.maximum(hF @ p["wF"].T + p["bF"], 0.0)
    hP_o = jnp.maximum(hP @ p["wP"].T + p["bP"], 0.0)
    cat = jnp.concatenate([hF_o, hP_o], axis=-1)
    f = jnp.maximum(cat @ p["wFuse"].T + p["bFuse"], 0.0)
    return hF_o, hP_o, f


if __name__ == "__main__":
    feat_dim, fusion_dim = 64, 64
    B, N = 2, 8  # 16 rows total (small demo; tile auto-clamps, grid still has 2 steps)

    key = jax.random.PRNGKey(0)
    k_hF, k_hP, k_params = jax.random.split(key, 3)
    hF = jax.random.normal(k_hF, (B, N, feat_dim), jnp.float32)
    hP = jax.random.normal(k_hP, (B, N, feat_dim), jnp.float32)
    params = init_params(k_params, feat_dim, fusion_dim)

    # Pack once (outside the per-call hot path).  compute_dtype=jnp.bfloat16 halves the
    # matmul-input bandwidth on v5e/v6e/v7x but loosens the 1e-4 tolerance below.
    packed = pack_params(params, compute_dtype=jnp.float32)

    outs = conv_aggregation(hF, hP, packed)
    outs = jax.block_until_ready(outs)

    refs = _reference(hF, hP, params)
    for o, r in zip(outs, refs):
        assert o.shape == r.shape and o.dtype == r.dtype
        assert jnp.max(jnp.abs(o - r)) < 1e-4

    print("KERNEL_OK")
</pallas_src>

<mosaic_0001>
module attributes {stable_mosaic.version = 11 : i64} {
  func.func @_conv_agg_kernel(%arg0: i32, %arg1: memref<8x64xf32, #tpu.memory_space<vmem>>, %arg2: memref<8x64xf32, #tpu.memory_space<vmem>>, %arg3: memref<64x64xf32, #tpu.memory_space<vmem>>, %arg4: memref<1x64xf32, #tpu.memory_space<vmem>>, %arg5: memref<64x64xf32, #tpu.memory_space<vmem>>, %arg6: memref<1x64xf32, #tpu.memory_space<vmem>>, %arg7: memref<64x64xf32, #tpu.memory_space<vmem>>, %arg8: memref<64x64xf32, #tpu.memory_space<vmem>>, %arg9: memref<1x64xf32, #tpu.memory_space<vmem>>, %arg10: memref<8x64xf32, #tpu.memory_space<vmem>>, %arg11: memref<8x64xf32, #tpu.memory_space<vmem>>, %arg12: memref<8x64xf32, #tpu.memory_space<vmem>>) attributes {dimension_semantics = [#tpu.dimension_semantics<parallel>], iteration_bounds = array<i64: 2>, scalar_prefetch = 0 : i64, scratch_operands = 0 : i64, tpu.core_type = #tpu.core_type<tc>, window_params = [{transform_indices = @transform_0, window_bounds = array<i64: 8, 64>}, {transform_indices = @transform_1, window_bounds = array<i64: 8, 64>}, {pipeline_mode = #tpu.pipeline_mode<synchronous>, transform_indices = @transform_2, window_bounds = array<i64: 64, 64>}, {pipeline_mode = #tpu.pipeline_mode<synchronous>, transform_indices = @transform_3, window_bounds = array<i64: 1, 64>}, {pipeline_mode = #tpu.pipeline_mode<synchronous>, transform_indices = @transform_4, window_bounds = array<i64: 64, 64>}, {pipeline_mode = #tpu.pipeline_mode<synchronous>, transform_indices = @transform_5, window_bounds = array<i64: 1, 64>}, {pipeline_mode = #tpu.pipeline_mode<synchronous>, transform_indices = @transform_6, window_bounds = array<i64: 64, 64>}, {pipeline_mode = #tpu.pipeline_mode<synchronous>, transform_indices = @transform_7, window_bounds = array<i64: 64, 64>}, {pipeline_mode = #tpu.pipeline_mode<synchronous>, transform_indices = @transform_8, window_bounds = array<i64: 1, 64>}, {transform_indices = @transform_9, window_bounds = array<i64: 8, 64>}, {transform_indices = @transform_10, window_bounds = array<i64: 8, 64>}, {transform_indices = @transform_11, window_bounds = array<i64: 8, 64>}]} {
    %c0 = arith.constant 0 : index
    %c0_0 = arith.constant 0 : index
    %0 = vector.load %arg1[%c0, %c0_0] : memref<8x64xf32, #tpu.memory_space<vmem>>, vector<8x64xf32>
    %c0_1 = arith.constant 0 : index
    %c0_2 = arith.constant 0 : index
    %1 = vector.load %arg2[%c0_1, %c0_2] : memref<8x64xf32, #tpu.memory_space<vmem>>, vector<8x64xf32>
    %c0_3 = arith.constant 0 : index
    %c0_4 = arith.constant 0 : index
    %2 = vector.load %arg3[%c0_3, %c0_4] : memref<64x64xf32, #tpu.memory_space<vmem>>, vector<64x64xf32>
    %cst = arith.constant dense<0.000000e+00> : vector<8x64xf32>
    %3 = tpu.matmul %0, %2, %cst {dimension_numbers = #tpu.dot_dimension_numbers<[1], [0], [0], [1], [0, 0, 1, 1], [], []>} : vector<8x64xf32>, vector<64x64xf32>, vector<8x64xf32> -> vector<8x64xf32>
    %c0_5 = arith.constant 0 : index
    %c0_6 = arith.constant 0 : index
    %4 = vector.load %arg4[%c0_5, %c0_6] : memref<1x64xf32, #tpu.memory_space<vmem>>, vector<1x64xf32>
    %5 = vector.broadcast %4 : vector<1x64xf32> to vector<8x64xf32>
    %6 = arith.addf %3, %5 : vector<8x64xf32>
    %cst_7 = arith.constant 0.000000e+00 : f32
    %7 = vector.broadcast %cst_7 : f32 to vector<8x64xf32>
    %8 = arith.maximumf %6, %7 : vector<8x64xf32>
    %c0_8 = arith.constant 0 : index
    %c0_9 = arith.constant 0 : index
    %9 = vector.load %arg5[%c0_8, %c0_9] : memref<64x64xf32, #tpu.memory_space<vmem>>, vector<64x64xf32>
    %cst_10 = arith.constant dense<0.000000e+00> : vector<8x64xf32>
    %10 = tpu.matmul %1, %9, %cst_10 {dimension_numbers = #tpu.dot_dimension_numbers<[1], [0], [0], [1], [0, 0, 1, 1], [], []>} : vector<8x64xf32>, vector<64x64xf32>, vector<8x64xf32> -> vector<8x64xf32>
    %c0_11 = arith.constant 0 : index
    %c0_12 = arith.constant 0 : index
    %11 = vector.load %arg6[%c0_11, %c0_12] : memref<1x64xf32, #tpu.memory_space<vmem>>, vector<1x64xf32>
    %12 = vector.broadcast %11 : vector<1x64xf32> to vector<8x64xf32>
    %13 = arith.addf %10, %12 : vector<8x64xf32>
    %cst_13 = arith.constant 0.000000e+00 : f32
    %14 = vector.broadcast %cst_13 : f32 to vector<8x64xf32>
    %15 = arith.maximumf %13, %14 : vector<8x64xf32>
    %c0_14 = arith.constant 0 : index
    %c0_15 = arith.constant 0 : index
    %16 = vector.load %arg7[%c0_14, %c0_15] : memref<64x64xf32, #tpu.memory_space<vmem>>, vector<64x64xf32>
    %cst_16 = arith.constant dense<0.000000e+00> : vector<8x64xf32>
    %17 = tpu.matmul %8, %16, %cst_16 {dimension_numbers = #tpu.dot_dimension_numbers<[1], [0], [0], [1], [0, 0, 1, 1], [], []>} : vector<8x64xf32>, vector<64x64xf32>, vector<8x64xf32> -> vector<8x64xf32>
    %c0_17 = arith.constant 0 : index
    %c0_18 = arith.constant 0 : index
    %18 = vector.load %arg8[%c0_17, %c0_18] : memref<64x64xf32, #tpu.memory_space<vmem>>, vector<64x64xf32>
    %cst_19 = arith.constant dense<0.000000e+00> : vector<8x64xf32>
    %19 = tpu.matmul %15, %18, %cst_19 {dimension_numbers = #tpu.dot_dimension_numbers<[1], [0], [0], [1], [0, 0, 1, 1], [], []>} : vector<8x64xf32>, vector<64x64xf32>, vector<8x64xf32> -> vector<8x64xf32>
    %20 = arith.addf %17, %19 : vector<8x64xf32>
    %c0_20 = arith.constant 0 : index
    %c0_21 = arith.constant 0 : index
    %21 = vector.load %arg9[%c0_20, %c0_21] : memref<1x64xf32, #tpu.memory_space<vmem>>, vector<1x64xf32>
    %22 = vector.broadcast %21 : vector<1x64xf32> to vector<8x64xf32>
    %23 = arith.addf %20, %22 : vector<8x64xf32>
    %cst_22 = arith.constant 0.000000e+00 : f32
    %24 = vector.broadcast %cst_22 : f32 to vector<8x64xf32>
    %25 = arith.maximumf %23, %24 : vector<8x64xf32>
    %c0_23 = arith.constant 0 : index
    %c0_24 = arith.constant 0 : index
    %26 = vector.load %arg10[%c0_23, %c0_24] : memref<8x64xf32, #tpu.memory_space<vmem>>, vector<8x64xf32>
    tpu.vector_store %arg10[%c0_23, %c0_24], %8 {strides = array<i32>} : memref<8x64xf32, #tpu.memory_space<vmem>>, vector<8x64xf32>,
    %c0_25 = arith.constant 0 : index
    %c0_26 = arith.constant 0 : index
    %27 = vector.load %arg11[%c0_25, %c0_26] : memref<8x64xf32, #tpu.memory_space<vmem>>, vector<8x64xf32>
    tpu.vector_store %arg11[%c0_25, %c0_26], %15 {strides = array<i32>} : memref<8x64xf32, #tpu.memory_space<vmem>>, vector<8x64xf32>,
    %c0_27 = arith.constant 0 : index
    %c0_28 = arith.constant 0 : index
    %28 = vector.load %arg12[%c0_27, %c0_28] : memref<8x64xf32, #tpu.memory_space<vmem>>, vector<8x64xf32>
    tpu.vector_store %arg12[%c0_27, %c0_28], %25 {strides = array<i32>} : memref<8x64xf32, #tpu.memory_space<vmem>>, vector<8x64xf32>,
    return
  }
  func.func @transform_0(%arg0: i32) -> (i32, i32) {
    %c0_i32 = arith.constant 0 : i32
    %c0_i32_0 = arith.constant 0 : i32
    return %arg0, %c0_i32 : i32, i32
  }
  func.func @transform_1(%arg0: i32) -> (i32, i32) {
    %c0_i32 = arith.constant 0 : i32
    %c0_i32_0 = arith.constant 0 : i32
    return %arg0, %c0_i32 : i32, i32
  }
  func.func @transform_2(%arg0: i32) -> (i32, i32) {
    %c0_i32 = arith.constant 0 : i32
    %c0_i32_0 = arith.constant 0 : i32
    %c0_i32_1 = arith.constant 0 : i32
    return %c0_i32, %c0_i32_0 : i32, i32
  }
  func.func @transform_3(%arg0: i32) -> (i32, i32) {
    %c0_i32 = arith.constant 0 : i32
    %c0_i32_0 = arith.constant 0 : i32
    %c0_i32_1 = arith.constant 0 : i32
    return %c0_i32, %c0_i32_0 : i32, i32
  }
  func.func @transform_4(%arg0: i32) -> (i32, i32) {
    %c0_i32 = arith.constant 0 : i32
    %c0_i32_0 = arith.constant 0 : i32
    %c0_i32_1 = arith.constant 0 : i32
    return %c0_i32, %c0_i32_0 : i32, i32
  }
  func.func @transform_5(%arg0: i32) -> (i32, i32) {
    %c0_i32 = arith.constant 0 : i32
    %c0_i32_0 = arith.constant 0 : i32
    %c0_i32_1 = arith.constant 0 : i32
    return %c0_i32, %c0_i32_0 : i32, i32
  }
  func.func @transform_6(%arg0: i32) -> (i32, i32) {
    %c0_i32 = arith.constant 0 : i32
    %c0_i32_0 = arith.constant 0 : i32
    %c0_i32_1 = arith.constant 0 : i32
    return %c0_i32, %c0_i32_0 : i32, i32
  }
  func.func @transform_7(%arg0: i32) -> (i32, i32) {
    %c0_i32 = arith.constant 0 : i32
    %c0_i32_0 = arith.constant 0 : i32
    %c0_i32_1 = arith.constant 0 : i32
    return %c0_i32, %c0_i32_0 : i32, i32
  }
  func.func @transform_8(%arg0: i32) -> (i32, i32) {
    %c0_i32 = arith.constant 0 : i32
    %c0_i32_0 = arith.constant 0 : i32
    %c0_i32_1 = arith.constant 0 : i32
    return %c0_i32, %c0_i32_0 : i32, i32
  }
  func.func @transform_9(%arg0: i32) -> (i32, i32) {
    %c0_i32 = arith.constant 0 : i32
    %c0_i32_0 = arith.constant 0 : i32
    return %arg0, %c0_i32 : i32, i32
  }
  func.func @transform_10(%arg0: i32) -> (i32, i32) {
    %c0_i32 = arith.constant 0 : i32
    %c0_i32_0 = arith.constant 0 : i32
    return %arg0, %c0_i32 : i32, i32
  }
  func.func @transform_11(%arg0: i32) -> (i32, i32) {
    %c0_i32 = arith.constant 0 : i32
    %c0_i32_0 = arith.constant 0 : i32
    return %arg0, %c0_i32 : i32, i32
  }
}

</mosaic_0001>

<bundles_post_ra>
// kernel: tpu_custom_call.1
= control target key start
LH: loop header
LB: loop body
LE: loop exit
PB: predicated region body
PF: predicated region fallthrough
CT: control target
= control target key end

     0   :  { %s1719_s0 = inlined_call_operand.hbm [shape: f32[16,64], index: 0, kind: input, shape index: {}]   ;;  %s1720_s1 = inlined_call_operand.hbm [shape: f32[16,64], index: 1, kind: input, shape index: {}]   ;;  %s1721_s2 = inlined_call_operand.hbm [shape: f32[64,64], index: 2, kind: input, shape index: {}]   ;;  %s1722_s3 = inlined_call_operand.vmem [shape: f32[1,64], index: 3, kind: input, shape index: {}]   ;;  %s1723_s4 = inlined_call_operand.hbm [shape: f32[64,64], index: 4, kind: input, shape index: {}]   ;;  %s1724_s5 = inlined_call_operand.vmem [shape: f32[1,64], index: 5, kind: input, shape index: {}]   ;;  %s1725_s6 = inlined_call_operand.hbm [shape: f32[64,64], index: 6, kind: input, shape index: {}]   ;;  %s1726_s7 = inlined_call_operand.hbm [shape: f32[64,64], index: 7, kind: input, shape index: {}]   ;;  %s1727_s8 = inlined_call_operand.vmem [shape: f32[1,64], index: 8, kind: input, shape index: {}]   ;;  %s1728_s9 = inlined_call_operand.hbm [shape: f32[16,64], index: 9, kind: output, shape index: {0}]   ;;  %s1729_s10 = inlined_call_operand.hbm [shape: f32[16,64], index: 10, kind: output, shape index: {1}]   ;;  %s1730_s11 = inlined_call_operand.hbm [shape: f32[16,64], index: 11, kind: output, shape index: {2}]  }
   0x1   :  { %1739 = sst [smem:[#allocation30_spill]] %s1721_s2 }
   0x2   :  { %1740 = sst [smem:[#allocation31_spill]] %s1723_s4 }
   0x3   :  { %1741 = sst [smem:[#allocation32_spill]] %s1725_s6 }
   0x4   :  { %1742 = sst [smem:[#allocation33_spill]] %s1726_s7 }
   0x5   :  { %17 = vsyncpa [#allocation3], 0 }
   0x6   :  { %19 = vsyncpa [#allocation3 + $0x1], 0 }
   0x7   :  { %20 = vsyncpa [#allocation6], 0 }
   0x8   :  { %22 = vsyncpa [#allocation6 + $0x1], 0 }
   0x9   :  { %23 = vsyncpa [#allocation9], 0 }
   0xa   :  { %24 = vsyncpa [#allocation12], 0 }
   0xb   :  { %25 = vsyncpa [#allocation4], 0 }
   0xc   :  { %27 = vsyncpa [#allocation4 + $0x1], 0 }
   0xd   :  { %28 = vsyncpa [#allocation15], 0 }
   0xe   :  { %30 = vsyncpa [#allocation15 + $0x1], 0  ;;  %s1451_s17 = smov 0   ;;  %s1453_s18 = smov 0  }
   0xf   :  { %s1455_s19 = smov 0   ;;  %s1457_s20 = smov 0  }
  0x10 LB: > { %1743 = sst [smem:[#allocation24_spill]] %s1371_s17  ;;  %s1475_s24 = sadd.s32 4294967295, %s1383_s20   ;;  %s1383_s20 = sphi %s1457_s20, %s1765_s20   ;;  %s1379_s19 = sphi %s1455_s19, %s1767_s19   ;;  %s1375_s18 = sphi %s1453_s18, %s1769_s18   ;;  %s1371_s17 = sphi %s1451_s17, %s1768_s17  }
  0x11   : > { %1744 = sst [smem:[#allocation25_spill]] %s1379_s19  ;;  %p922_p0 = scmp.ge.s32.totalorder %s1383_s20, 1 }
  0x12   : > { %1745 = sst [smem:[#allocation26_spill]] %s1383_s20  ;;  %p57_p1 = scmp.eq.s32.totalorder %s1475_s24, 0 }
  0x13   : > { %s1746_s2 = sld [smem:[#allocation30_spill]]  ;;  %p318_p2 = scmp.lt.s32.totalorder %s1383_s20, 3 }
  0x14   : > { %s1385_s26 = smov [#allocation7]   ;;  %s1748_s4 = sld [smem:[#allocation31_spill]] }
  0x15   : > { %p1480_p3 = pnand %p922_p0, %p318_p2  ;;  %s331_s27 = sshll.u32 %s1385_s26, 4  ;;  %s332_s27 = int_to_ptr.vmem [resolvable:$true] %s331_s27 }
  0x16   : > { %s1750_s6 = sld [smem:[#allocation32_spill]]  ;;  %s1386_s16 = smov [#allocation8]  }
  0x17   : > { %p980_p4 = pneg %p1480_p3  ;;  %s348_s21 = sshll.u32 %s1386_s16, 4  ;;  %s349_s21 = int_to_ptr.vmem [resolvable:$true] %s348_s21 }
  0x18   : > { %s1387_s22 = smov 128   ;;  %s1388_s26 = smov 8  }
  0x19   : > { %s329_s23 = sshll.u32 %s1746_s2, 4  ;;  %p1492_p6 = pnand %p980_p4, %p57_p1  ;;  %s330_s23 = int_to_ptr.hbm [resolvable:$true] %s329_s23 }
  0x1a   : > { %s346_s30 = sshll.u32 %s1748_s4, 4  ;;  %s1751_s7 = sld [smem:[#allocation33_spill]]  ;;  %s347_s30 = int_to_ptr.hbm [resolvable:$true] %s346_s30 }
  0x1b   : > { %983 = dma.hbm_to_vmem [thread:$0]  (!%p1492_p6), %s330_s23, 1024, %s332_s27, [#allocation6], %s1387_s22, %s1387_s22, %s1388_s26  }
  0x1c   : > { %s363_s15 = sshll.u32 %s1750_s6, 4  ;;  %s1389_s14 = smov [#allocation10]   ;;  %s364_s15 = int_to_ptr.hbm [resolvable:$true] %s363_s15 }
  0x1d   : > { %986 = dma.hbm_to_vmem [thread:$0]  (!%p1492_p6), %s347_s30, 1024, %s349_s21, [#allocation9], %s1387_s22, %s1387_s22, %s1388_s26  }
  0x1e   : > { %s365_s16 = sshll.u32 %s1389_s14, 4  ;;  %s1390_s23 = smov [#allocation11]   ;;  %s366_s16 = int_to_ptr.vmem [resolvable:$true] %s365_s16 }
  0x1f   : > { %989 = dma.hbm_to_vmem [thread:$0]  (!%p1492_p6), %s364_s15, 1024, %s366_s16, [#allocation9], %s1387_s22, %s1387_s22, %s1388_s26  }
  0x20   : > { %s377_s13 = sshll.u32 %s1751_s7, 4  ;;  %s379_s27 = sshll.u32 %s1390_s23, 4  ;;  %s378_s13 = int_to_ptr.hbm [resolvable:$true] %s377_s13  ;;  %s380_s27 = int_to_ptr.vmem [resolvable:$true] %s379_s27 }
  0x21   : > { %992 = dma.hbm_to_vmem [thread:$0]  (!%p1492_p6), %s378_s13, 1024, %s380_s27, [#allocation12], %s1387_s22, %s1387_s22, %s1388_s26  }
  0x22   : > { %s1731_s30 = sadd.s32 4294967294, %s1383_s20   ;;  %s1512_s21 = sadd.s32 1, %s1383_s20  }
  0x23   : > { %1752 = sst [smem:[#allocation27_spill]] %s1512_s21  ;;  %s40_s28 = ssub.s32 %s1383_s20, %s1512_s21 }
  0x24   : > { %s43_s29 = sadd.s32 1, %s1379_s19  ;;  %p41_p7 = scmp.eq.s32.totalorder %s40_s28, 0 }
  0x25   : > { %p50_p8 = scmp.ne.s32.totalorder %s1379_s19, %s1375_s18  ;;  %p51_p9 = scmp.eq.s32.totalorder %s1383_s20, 0 }
  0x26   : > { %p56_p10 = scmp.ne.s32.totalorder %s1375_s18, %s1371_s17  ;;  %p253_p13 = scmp.eq.s32.totalorder %s1475_s24, 1 }
  0x27   : > { %s1523_s15 = scalar_select %p41_p7, %s1379_s19, %s43_s29  }
  0x28   : > { %p1525_p11 = por %p51_p9, %p50_p8  ;;  %p1531_p12 = por %p57_p1, %p56_p10 }
  0x29   : > { %1753 = sst [smem:[#allocation28_spill]] %s1523_s15  ;;  %p259_p0 = scmp.eq.s32.totalorder %s1731_s30, 1 }
  0x2a   : > { %p1014_p2 = scmp.lt.s32.totalorder %s1383_s20, 2  ;;  %s396_s22 = sand.u32 1, %s1379_s19  }
  0x2b   : > { %p1540_p4 = por %p253_p13, %p50_p8  ;;  %p1544_p6 = por %p259_p0, %p56_p10 }
  0x2c   : > { %s1548_s16 = sshll.u32 %s396_s22, 3  ;;  %s929_s23 = sshll.u32 %s1383_s20, 3 }
  0x2d   : > { %s1757_s13 = scalar_select %p1544_p6, 1, 0 }
  0x2e   : > { %s404_s29 = scalar_lea.hbm %s1719_s0, %s929_s23  ;;  %s400_s2 = scalar_lea.vmem [#allocation2], %s1548_s16 }
  0x2f   : > { %1758 = sst [smem:[#allocation29_spill]] %s1757_s13  ;;  %s408_s30 = sshll.u32 %s400_s2, 4  ;;  %s409_s30 = int_to_ptr.vmem [resolvable:$true] %s408_s30 }
  0x30   : > { %s406_s4 = sshll.u32 %s404_s29, 4  ;;  %p1557_p7 = pnand %p1014_p2, %p1525_p11  ;;  %s407_s4 = int_to_ptr.hbm [resolvable:$true] %s406_s4 }
  0x31   : > { %s423_s19 = scalar_lea.hbm %s1720_s1, %s929_s23  ;;  %s415_s21 = sand.u32 1, %s1383_s20  }
  0x32   : > { %s397_s13 = scalar_lea.sflag [#allocation3], %s396_s22  ;;  %s1181_s27 = sshra.s32 %s407_s4, 4  ;;  %s1182_s27 = int_to_ptr.hbm [resolvable:$true] %s1181_s27 }
  0x33   : > { %s1183_s28 = scalar_lea.hbm %s1182_s27, 8  ;;  %p1185_p9 = pneg %p1557_p7 }
  0x34   : > { %p1184_p8 = scmp.ne.s32.totalorder %s1182_s27, %s1183_s28  ;;  %s1188_s29 = scalar_lea.hbm %s1719_s0, 16 }
  0x35   : > { %p1189_p13 = scmp.lt.s32.totalorder %s1182_s27, %s1719_s0  ;;  %p1190_p0 = scmp.lt.s32.totalorder %s1188_s29, %s1183_s28 }
  0x36   : > { %p1186_p10 = pnand %p1185_p9, %p1184_p8 }
  0x37   : > { %p1191_p2 = por %p1190_p0, %p1189_p13 }
  0x38   : > { %p1187_p11 = pneg %p1186_p10 }
  0x3a   : > { %p1192_p5 = pnand %p1191_p2, %p1187_p11 }
  0x3c   : > { %1195 = shalt.err (!%p1192_p5)
}
  0x3d   : > { %996 = dma.hbm_to_vmem [thread:$0]  (!%p1557_p7), %s407_s4, 128, %s409_s30, %s397_s13  }
  0x3e   : > { %s425_s22 = sshll.u32 %s423_s19, 4  ;;  %s419_s23 = scalar_lea.vmem [#allocation5], %s1548_s16  ;;  %s426_s22 = int_to_ptr.hbm [resolvable:$true] %s425_s22 }
  0x3f   : > { %s427_s20 = sshll.u32 %s419_s23, 4  ;;  %s416_s2 = scalar_lea.sflag [#allocation6], %s415_s21  ;;  %s428_s20 = int_to_ptr.vmem [resolvable:$true] %s427_s20 }
  0x40   : > { %s1211_s14 = sshra.s32 %s426_s22, 4  ;;  %s1218_s29 = scalar_lea.hbm %s1720_s1, 16  ;;  %s1212_s14 = int_to_ptr.hbm [resolvable:$true] %s1211_s14 }
  0x41   : > { %s1213_s17 = scalar_lea.hbm %s1212_s14, 8  ;;  %p1219_p5 = scmp.lt.s32.totalorder %s1212_s14, %s1720_s1 }
  0x42   : > { %p1214_p8 = scmp.ne.s32.totalorder %s1212_s14, %s1213_s17  ;;  %p1220_p13 = scmp.lt.s32.totalorder %s1218_s29, %s1213_s17 }
  0x44   : > { %p1216_p10 = pnand %p1214_p8, %p1185_p9  ;;  %p1221_p0 = por %p1220_p13, %p1219_p5 }
  0x46   : > { %p1217_p11 = pneg %p1216_p10 }
  0x48   : > { %p1222_p2 = pnand %p1221_p0, %p1217_p11 }
  0x4a   : > { %1225 = shalt.err (!%p1222_p2)
}
  0x4b   : > { %999 = dma.hbm_to_vmem [thread:$0]  (!%p1557_p7), %s426_s22, 128, %s428_s20, %s416_s2  }
  0x4c   : > { %436 = sbr.rel (%p1480_p3) target bundleno = 379 (0x17b), region = 56  ;;  %s1593_s19 = sand.u32 (!%p1480_p3), 1, %s1375_s18  }
  0x4d   : > { %s1596_s30 = sshll.u32 (!%p1480_p3), %s1593_s19, 3  ;;  %s439_s21 = scalar_lea.sflag (!%p1480_p3), [#allocation3], %s1593_s19 }
  0x4e   : > { %s442_s17 = scalar_lea.vmem (!%p1480_p3), [#allocation2], %s1596_s30 }
  0x51   : > { %1342 = dma.done.wait (%p1531_p12), %s439_s21, 128  }
  0x52   : > { %1344 = vsyncadd (%p1531_p12), %s439_s21, 4294967168  ;;  %s448_s6 = sand.u32 1, %s1475_s24   ;;  %s452_s25 = scalar_lea.vmem [#allocation5], %s1596_s30 }
  0x53   : > { %s449_s20 = scalar_lea.sflag [#allocation6], %s448_s6 }
  0x54   : > { %1346 = dma.done.wait (%p1531_p12), %s449_s20, 128  }
  0x55   : > { %1348 = vsyncadd (%p1531_p12), %s449_s20, 4294967168 }
  0x56   : > { %1350 = dma.done.wait (%p57_p1), [#allocation6], 1024  }
  0x57   : > { %1352 = vsyncadd (%p57_p1), [#allocation6], 4294966272 }
  0x58   : > { %1354 = dma.done.wait (%p57_p1), [#allocation9], 2048  }
  0x59   : > { %1356 = vsyncadd (%p57_p1), [#allocation9], 4294965248 }
  0x5a   : > { %1358 = dma.done.wait (%p57_p1), [#allocation12], 1024  }
  0x5b   : > { %1360 = vsyncadd (%p57_p1), [#allocation12], 4294966272  ;;  %v536_v0 = vld [vmem:[#allocation7 + $0x38] sm:$0xff]  ;;  %v535_v2 = vld [vmem:[#allocation7 + $0x30] sm:$0xff]  ;;  %vm541_vm0 = vcmask 523264   ;;  %s519_s22 = scalar_lea.vmem [#allocation14], %s1596_s30 }
  0x5c   : > { %v573_v1 = vld [vmem:[#allocation8 + $0x38] sm:$0xff]  ;;  %553 = vmatpush.msra.mxu0 %v536_v0  ;;  %v572_v3 = vld [vmem:[#allocation8 + $0x30] sm:$0xff]  ;;  %v534_v4 = vld [vmem:[#allocation7 + $0x28] sm:$0xff]  ;;  %s512_s23 = scalar_lea.vmem [#allocation13], %s1596_s30  ;;  %s1643_s2 = sshll.u32 %s1475_s24, 3 }
  0x5d   : > { %589 = vmatpush.msra.mxu1 %v573_v1  ;;  %v571_v5 = vld [vmem:[#allocation8 + $0x28] sm:$0xff]  ;;  %v533_v6 = vld [vmem:[#allocation7 + $0x20] sm:$0xff]  ;;  %v532_v8 = vld [vmem:[#allocation7 + $0x18] sm:$0xff]  ;;  %s708_s28 = scalar_lea.hbm %s1729_s10, %s1643_s2  ;;  %s710_s29 = sshll.u32 %s519_s22, 4  ;;  %s711_s29 = int_to_ptr.vmem [resolvable:$true] %s710_s29 }
  0x5e   : > { %554 = vmatpush.msra.mxu0 %v535_v2  ;;  %v570_v7 = vld [vmem:[#allocation8 + $0x20] sm:$0xff]  ;;  %v569_v9 = vld [vmem:[#allocation8 + $0x18] sm:$0xff]  ;;  %v616_v12 = vld [vmem:[#allocation11 + $0x30] sm:$0xff]  ;;  %s712_s7 = sshll.u32 %s708_s28, 4  ;;  %s1651_s4 = scalar_lea.sflag [#allocation15], %s448_s6  ;;  %s713_s7 = int_to_ptr.hbm [resolvable:$true] %s712_s7 }
  0x5f   : > { %590 = vmatpush.msra.mxu1 %v572_v3  ;;  %v617_v10 = vld [vmem:[#allocation11 + $0x38] sm:$0xff]  ;;  %v608_v13 = vld [vmem:[#allocation10 + $0x30] sm:$0xff]  ;;  %v530_v16 = vld [vmem:[#allocation7 + $0x8] sm:$0xff]  ;;  %s1255_s21 = sshra.s32 %s713_s7, 4  ;;  %s1261_s12 = scalar_lea.hbm %s1729_s10, 16  ;;  %s1256_s21 = int_to_ptr.hbm [resolvable:$true] %s1255_s21 }
  0x60   : > { %555 = vmatpush.msra.mxu0 %v534_v4  ;;  %v609_v11 = vld [vmem:[#allocation10 + $0x38] sm:$0xff]  ;;  %v531_v14 = vld [vmem:[#allocation7 + $0x10] sm:$0xff]  ;;  %629 = vmatpush.msra.mxu2 %v617_v10  ;;  %v615_v17 = vld [vmem:[#allocation11 + $0x28] sm:$0xff]  ;;  %p1262_p7 = scmp.lt.s32.totalorder %s1256_s21, %s1729_s10 }
  0x61   : > { %591 = vmatpush.msra.mxu1 %v571_v5  ;;  %v568_v15 = vld [vmem:[#allocation8 + $0x10] sm:$0xff]  ;;  %652 = vmatpush.msra.mxu3 %v609_v11  ;;  %v607_v18 = vld [vmem:[#allocation10 + $0x28] sm:$0xff]  ;;  %v614_v20 = vld [vmem:[#allocation11 + $0x20] sm:$0xff] }
  0x62   : > { %556 = vmatpush.msra.mxu0 %v533_v6  ;;  %v567_v19 = vld [vmem:[#allocation8 + $0x8] sm:$0xff]  ;;  %630 = vmatpush.msra.mxu2 %v616_v12  ;;  %v606_v21 = vld [vmem:[#allocation10 + $0x20] sm:$0xff]  ;;  %v528_v25 = vld [vmem:[%s452_s25] sm:$0xff] }
  0x63   : > { %592 = vmatpush.msra.mxu1 %v570_v7  ;;  %653 = vmatpush.msra.mxu3 %v608_v13  ;;  %v529_v22 = vld [vmem:[#allocation7] sm:$0xff]  ;;  %v613_v26 = vld [vmem:[#allocation11 + $0x18] sm:$0xff]  ;;  %v612_v28 = vld [vmem:[#allocation11 + $0x10] sm:$0xff] }
  0x64   : > { %557 = vmatpush.msra.mxu0 %v532_v8  ;;  %v566_v23 = vld [vmem:[#allocation8] sm:$0xff]  ;;  %631 = vmatpush.msra.mxu2 %v615_v17  ;;  %v605_v27 = vld [vmem:[#allocation10 + $0x18] sm:$0xff]  ;;  %v604_v29 = vld [vmem:[#allocation10 + $0x10] sm:$0xff] }
  0x65   : > { %593 = vmatpush.msra.mxu1 %v569_v9  ;;  %654 = vmatpush.msra.mxu3 %v607_v18  ;;  %v527_v24 = vld [vmem:[%s442_s17] sm:$0xff]  ;;  %s1257_s17 = scalar_lea.hbm %s1256_s21, 8 }
  0x66   : > { %558 = vmatpush.msra.mxu0 %v531_v14  ;;  %632 = vmatpush.msra.mxu2 %v614_v20  ;;  %v611_v30 = vld [vmem:[#allocation11 + $0x8] sm:$0xff]  ;;  %v610_v32 = vld [vmem:[#allocation11] sm:$0xff]  ;;  %p1258_p1 = scmp.ne.s32.totalorder %s1256_s21, %s1257_s17  ;;  %p1263_p9 = scmp.lt.s32.totalorder %s1261_s12, %s1257_s17 }
  0x67   : > { %594 = vmatpush.msra.mxu1 %v568_v15  ;;  %655 = vmatpush.msra.mxu3 %v606_v21  ;;  %v603_v31 = vld [vmem:[#allocation10 + $0x8] sm:$0xff]  ;;  %v602_v33 = vld [vmem:[#allocation10] sm:$0xff] }
  0x68   : > { %559 = vmatpush.msra.mxu0 %v530_v16  ;;  %633 = vmatpush.msra.mxu2 %v613_v26  ;;  %v1058_v34 = vld [vmem:[%s1722_s3] ss:$0 sm:$0xff]  ;;  %p1259_p3 = pnand %p1258_p1, %p1540_p4  ;;  %p1264_p8 = por %p1263_p9, %p1262_p7 }
  0x69   : > { %595 = vmatpush.msra.mxu1 %v567_v19  ;;  %656 = vmatpush.msra.mxu3 %v605_v27  ;;  %v1059_v35 = vld [vmem:[%s1724_s5] ss:$0 sm:$0xff] }
  0x6a   : > { %560 = vmatpush.msra.mxu0 %v529_v22  ;;  %634 = vmatpush.msra.mxu2 %v612_v28  ;;  %p1260_p12 = pneg %p1259_p3 }
  0x6b   : > { %596 = vmatpush.msra.mxu1 %v566_v23  ;;  %942 = vmatmul.msk.f32.vlgmr.msra.gmra.mxu0 %vm541_vm0, %v527_v24 }
  0x6c   : > { %943 = vmatmul.msk.f32.vlgmr.msra.gmra.mxu1 %vm541_vm0, %v528_v25  ;;  %657 = vmatpush.msra.mxu3 %v604_v29  ;;  %p1265_p10 = pnand %p1264_p8, %p1260_p12 }
  0x6d   : > { %635 = vmatpush.msra.mxu2 %v611_v30 }
  0x6e   : > { %658 = vmatpush.msra.mxu3 %v603_v31 }
  0x6f   : > { %636 = vmatpush.msra.mxu2 %v610_v32 }
  0x70   : > { %659 = vmatpush.msra.mxu3 %v602_v33 }
  0xe8   : > { %v562_v36 = vpop.f32.mrf.mxu0 }
  0xe9   : > { %v598_v37 = vpop.f32.mrf.mxu1  ;;  %v563_v38 = vadd.f32 %v1058_v34, %v562_v36 }
  0xea   : > { %v599_v39 = vadd.f32 %v1059_v35, %v598_v37 }
  0xeb   : > { %v565_v40 = vmax.f32 %v563_v38, 0.0 }
  0xec   : > { %v601_v41 = vmax.f32 %v599_v39, 0.0 }
  0xed   : > { %945 = vmatmul.msk.f32.vlgmr.msra.gmra.mxu3 %vm541_vm0, %v565_v40  ;;  %670 = vst.msk [vmem:[%s512_s23] sm:$0xff] %vm541_vm0, %v565_v40 }
  0xee   : > { %944 = vmatmul.msk.f32.vlgmr.msra.gmra.mxu2 %vm541_vm0, %v601_v41  ;;  %671 = vst.msk [vmem:[%s519_s22] sm:$0xff] %vm541_vm0, %v601_v41 }
  0xef   : > { %1268 = shalt.err (!%p1265_p10)
}
  0xf0   : > { %975 = dma.vmem_to_hbm [thread:$0]  (%p1540_p4), %s711_s29, 128, %s713_s7, %s1651_s4  }
  0xf1   : > { %s694_s15 = scalar_lea.hbm %s1728_s9, %s1643_s2  ;;  %s696_s22 = sshll.u32 %s512_s23, 4  ;;  %s697_s22 = int_to_ptr.vmem [resolvable:$true] %s696_s22 }
  0xf2   : > { %s698_s14 = sshll.u32 %s694_s15, 4  ;;  %s674_s27 = scalar_lea.sflag [#allocation4], %s1593_s19  ;;  %s699_s14 = int_to_ptr.hbm [resolvable:$true] %s698_s14 }
  0xf3   : > { %s1283_s28 = sshra.s32 %s699_s14, 4  ;;  %s1289_s29 = scalar_lea.hbm %s1728_s9, 16  ;;  %s1284_s28 = int_to_ptr.hbm [resolvable:$true] %s1283_s28 }
  0xf4   : > { %s1285_s21 = scalar_lea.hbm %s1284_s28, 8  ;;  %p1290_p0 = scmp.lt.s32.totalorder %s1284_s28, %s1728_s9 }
  0xf5   : > { %p1286_p11 = scmp.ne.s32.totalorder %s1284_s28, %s1285_s21  ;;  %p1291_p2 = scmp.lt.s32.totalorder %s1289_s29, %s1285_s21 }
  0xf7   : > { %p1287_p5 = pnand %p1286_p11, %p1540_p4  ;;  %p1292_p1 = por %p1291_p2, %p1290_p0 }
  0xf9   : > { %p1288_p13 = pneg %p1287_p5 }
  0xfb   : > { %p1293_p3 = pnand %p1292_p1, %p1288_p13 }
  0xfd   : > { %1296 = shalt.err (!%p1293_p3)
}
  0xfe   : > { %974 = dma.vmem_to_hbm [thread:$0]  (%p1540_p4), %s697_s22, 128, %s699_s14, %s674_s27   ;;  %v1060_v42 = vld [vmem:[%s1727_s8] ss:$0 sm:$0xff] }
  0xff   : > { %s722_s16 = scalar_lea.hbm %s1730_s11, %s1643_s2  ;;  %s526_s24 = scalar_lea.vmem [#allocation16], %s1596_s30 }
 0x100   : > { %s724_s6 = sshll.u32 %s526_s24, 4  ;;  %s726_s15 = sshll.u32 %s722_s16, 4  ;;  %s725_s6 = int_to_ptr.vmem [resolvable:$true] %s724_s6  ;;  %s727_s15 = int_to_ptr.hbm [resolvable:$true] %s726_s15 }
 0x101   : > { %s1311_s22 = sshra.s32 %s727_s15, 4  ;;  %s1317_s28 = scalar_lea.hbm %s1730_s11, 16  ;;  %s1312_s22 = int_to_ptr.hbm [resolvable:$true] %s1311_s22 }
 0x102   : > { %s1313_s14 = scalar_lea.hbm %s1312_s22, 8  ;;  %p1318_p8 = scmp.lt.s32.totalorder %s1312_s22, %s1730_s11 }
 0x103   : > { %p1314_p12 = scmp.ne.s32.totalorder %s1312_s22, %s1313_s14  ;;  %p1319_p10 = scmp.lt.s32.totalorder %s1317_s28, %s1313_s14 }
 0x105   : > { %p1315_p7 = pnand %p1314_p12, %p1540_p4  ;;  %p1320_p11 = por %p1319_p10, %p1318_p8 }
 0x107   : > { %p1316_p9 = pneg %p1315_p7 }
 0x109   : > { %p1321_p5 = pnand %p1320_p11, %p1316_p9 }
 0x170   : > { %v661_v44 = vpop.f32.mrf.mxu3 }
 0x171   : > { %v638_v43 = vpop.f32.mrf.mxu2 }
 0x172   : > { %v662_v45 = vadd.f32 %v661_v44, %v638_v43 }
 0x174   : > { %v668_v46 = vadd.f32 %v1060_v42, %v662_v45 }
 0x176   : > { %v669_v47 = vmax.f32 %v668_v46, 0.0 }
 0x178   : > { %672 = vst.msk [vmem:[%s526_s24] sm:$0xff] %vm541_vm0, %v669_v47 }
 0x179   : > { %1324 = shalt.err (!%p1321_p5)
}
 0x17a   : > { %976 = dma.vmem_to_hbm [thread:$0]  (%p1540_p4), %s725_s6, 128, %s727_s15, %s1651_s4  }
 0x17b PF: > { %s1760_s17 = sld [smem:[#allocation24_spill]] }
 0x17c   : > { %s1762_s29 = sld [smem:[#allocation26_spill]] }
 0x181   : > { %s738_s7 = sand.u32 1, %s1760_s17  }
 0x182   : > { %p1763_p13 = scmp.ge.s32.totalorder %s1762_s29, 2  ;;  %s739_s25 = scalar_lea.sflag [#allocation4], %s738_s7 }
 0x184   : > { %p1001_p0 = pnand %p1763_p13, %p1544_p6 }
 0x186   : > { %p1002_p2 = pneg %p1001_p0 }
 0x188   : > { %1362 = dma.done.wait (%p1002_p2), %s739_s25, 128  }
 0x189   : > { %1364 = vsyncadd (%p1002_p2), %s739_s25, 4294967168  ;;  %s1764_s19 = sadd.s32 4294967294, %s1762_s29  }
 0x18a   : > { %s748_s23 = sand.u32 1, %s1764_s19  }
 0x18b   : > { %s749_s12 = scalar_lea.sflag [#allocation15], %s748_s23 }
 0x18c   : > { %1366 = dma.done.wait (%p1002_p2), %s749_s12, 256  }
 0x18d   : > { %1368 = vsyncadd (%p1002_p2), %s749_s12, 4294967040  ;;  %s1765_s20 = sld [smem:[#allocation27_spill]]  ;;  %s1768_s17 = smov %s1375_s18 }
 0x18e   : > { %s1766_s26 = sld [smem:[#allocation25_spill]] }
 0x18f   : > { %s1767_s19 = sld [smem:[#allocation28_spill]] }
 0x193   : > { %p33_p4 = scmp.ge.s32.totalorder %s1765_s20, 4  }
 0x194   : > { %s1769_s18 = smov %s1766_s26 }
 0x195   :  { %35 = sbr.rel (!%p33_p4) target bundleno = 16 (0x10), region = 162 }
 0x19a   :  { %765 = vsyncpa [#allocation3], 1 }
 0x19b   :  { %767 = vsyncpa [#allocation3 + $0x1], 1 }
 0x19c   :  { %768 = vsyncpa [#allocation6], 1 }
 0x19d   :  { %770 = vsyncpa [#allocation6 + $0x1], 1 }
 0x19e   :  { %771 = vsyncpa [#allocation9], 1 }
 0x19f   :  { %772 = vsyncpa [#allocation12], 1 }
 0x1a0   :  { %773 = vsyncpa [#allocation4], 1 }
 0x1a1   :  { %775 = vsyncpa [#allocation4 + $0x1], 1 }
 0x1a2   :  { %776 = vsyncpa [#allocation15], 1 }
 0x1a3   :  { %778 = vsyncpa [#allocation15 + $0x1], 1 }

</bundles_post_ra>
